<compile_context>
chip_gen: v7x
topology: tpu7x:2x2x1
jax: 0.10.0
libtpu: 0.0.40
codegen_flags: <defaults>
</compile_context>

<pallas_src>
import math
import functools

import jax
import jax.numpy as jnp
from jax.experimental import pallas as pl
from jax.experimental.pallas import tpu as pltpu


def _round_up(x, m):
    return ((x + m - 1) // m) * m


def _vmem_capacity_bytes():
    try:
        return int(pltpu.get_tpu_info().vmem_capacity_bytes)
    except Exception:
        return 64 * 1024 * 1024  # conservative per-TC assumption (v7x)


def _value_net_kernel(x_ref, w1_ref, b1_ref, w2_ref, b2_ref, o_ref, *,
                      matmul_dtype, precision, approx_gelu):
    # x_ref:  (TM, H)      w1_ref: (H, H2)    b1_ref: (1, H2)
    # w2_ref: (1, H2) row  b2_ref: (1, 1)     o_ref:  (1, 1, TM) lane-dense row
    x = x_ref[...]
    if matmul_dtype is not None:
        # In-kernel cast: x streams from HBM in its original dtype, MXU runs in
        # matmul_dtype (bf16 fast path), accumulation stays f32.
        x = x.astype(matmul_dtype)

    h = jnp.dot(x, w1_ref[...],
                preferred_element_type=jnp.float32, precision=precision)
    h = h + b1_ref[...].astype(jnp.float32)

    if approx_gelu:
        # Opt-in tanh GELU (routes through the EUP slot); changes numerics vs
        # torch's default exact GELU.
        h = jax.nn.gelu(h, approximate=True)
    else:
        inv_sqrt2 = jnp.float32(1.0 / math.sqrt(2.0))
        h = 0.5 * h * (1.0 + jax.lax.erf(h * inv_sqrt2))

    # Layer 2 (output width 1): VPU multiply + lane reduction, f32.
    w2_row = w2_ref[...].astype(jnp.float32)                   # (1, H2)
    y = jnp.sum(h * w2_row, axis=-1, keepdims=True)            # (TM, 1)
    y = y + b2_ref[...].astype(jnp.float32)
    y = jax.nn.sigmoid(y)

    # Lane-dense store: one contiguous (1, 1, TM) row per grid step.
    o_ref[...] = y.reshape(o_ref.shape).astype(o_ref.dtype)


def value_estimator_forward(hidden_states, w1, b1, w2, b2, *,
                            tm=1024, matmul_dtype=jnp.bfloat16,
                            approx_gelu=False):
    """hidden_states: [B, S, H] -> value: [B, S, 1].

    w1: (H, H//2), b1: (H//2,), w2: (H//2, 1), b2: (1,)  (weights laid out for
    x @ w, i.e. the transpose of torch's nn.Linear.weight).
    matmul_dtype: dtype for the big MXU matmul (default bf16, cast in-kernel);
    pass None for exact f32 parity.  Output dtype follows hidden_states.dtype.
    """
    B, S, H = hidden_states.shape
    H2 = w1.shape[1]
    M = B * S
    out_dtype = hidden_states.dtype
    x_bytes = jnp.dtype(hidden_states.dtype).itemsize
    w_dtype = matmul_dtype if matmul_dtype is not None else w1.dtype
    w_bytes = jnp.dtype(w_dtype).itemsize
    out_bytes = jnp.dtype(out_dtype).itemsize

    # Sublane alignment for the x tile; prefer lane-dense (128) output rows.
    sub_align = 16 if x_bytes < 4 else 8
    align = 128 if M >= 128 else sub_align

    def _vmem_need(t, weight_bufs):
        return (2 * t * H * x_bytes                                   # x tiles (2-buf)
                + (t * H * w_bytes if matmul_dtype is not None else 0)  # in-kernel cast copy
                + weight_bufs * H * H2 * w_bytes                      # W1
                + t * H2 * 4                                          # f32 intermediate
                + 2 * t * out_bytes                                   # output rows (2-buf)
                + 8 * (H2 + 8) * 4                                    # biases / w2 row
                + (2 << 20))                                          # compiler scratch slack

    capacity = _vmem_capacity_bytes()
    budget = int(0.80 * capacity)

    tm = max(align, min(_round_up(tm, align), _round_up(M, align)))
    while tm > align and _vmem_need(tm, 1) > budget:
        tm = max(align, (tm // 2) // align * align)
    # TODO(synk): for very large H where even a single-buffered W1 exceeds the
    # budget (e.g. v7x 64 MiB/TC with H >~ 5-8k), add a K grid axis over H
    # ("arbitrary", last) with a (tm, H2) f32 accumulator scratch and run
    # GELU / layer-2 / sigmoid under pl.when(k == num_programs - 1).

    # Give the "parallel" row axis at least 2 blocks so v7x's 2 TensorCores can
    # both participate (harmless on single-TC v5e/v6e; skipped for tiny M).
    if M >= 256:
        while pl.cdiv(M, tm) < 2 and tm >= 2 * align:
            tm = max(align, (tm // 2) // align * align)

    G = pl.cdiv(M, tm)

    # No padding: the partial last block reads OOB garbage rows; they are
    # discarded by the [:M] slice below (no cross-row reduction in the math).
    x2d = hidden_states.reshape(M, H)
    w1_in = w1.astype(matmul_dtype) if matmul_dtype is not None else w1
    b1_2d = b1.reshape(1, H2)
    w2_row = w2.reshape(1, H2)
    b2_2d = b2.reshape(1, 1)

    # vmem_limit: actual need (worst case: double-buffered weights for the
    # fallback path) + slack, never the whole physical VMEM.
    vmem_limit = int(min(max(_vmem_need(tm, 2) + (4 << 20), 32 << 20),
                         int(0.9 * capacity)))
    vmem_limit = int(max(vmem_limit, _vmem_need(tm, 1) + (2 << 20)))

    kernel = functools.partial(
        _value_net_kernel,
        matmul_dtype=matmul_dtype,
        precision=(jax.lax.Precision.DEFAULT if matmul_dtype is not None
                   else jax.lax.Precision.HIGHEST),
        approx_gelu=approx_gelu,
    )

    def _call(single_buffer_weights):
        const_kwargs = (dict(pipeline_mode=pl.Buffered(1))
                        if single_buffer_weights else {})
        return pl.pallas_call(
            kernel,
            out_shape=jax.ShapeDtypeStruct((G, 1, tm), out_dtype),
            grid_spec=pltpu.PrefetchScalarGridSpec(
                num_scalar_prefetch=0,
                grid=(G,),
                in_specs=[
                    pl.BlockSpec((tm, H), lambda i: (i, 0)),                 # x rows (streamed)
                    pl.BlockSpec((H, H2), lambda i: (0, 0), **const_kwargs),  # W1 (resident)
                    pl.BlockSpec((1, H2), lambda i: (0, 0), **const_kwargs),  # b1
                    pl.BlockSpec((1, H2), lambda i: (0, 0), **const_kwargs),  # w2 as a row
                    pl.BlockSpec((1, 1), lambda i: (0, 0), **const_kwargs),   # b2
                ],
                out_specs=pl.BlockSpec((1, 1, tm), lambda i: (i, 0, 0)),
            ),
            compiler_params=pltpu.CompilerParams(
                dimension_semantics=("parallel",),
                vmem_limit_bytes=vmem_limit,
            ),
        )(x2d, w1_in, b1_2d, w2_row, b2_2d)

    try:
        out = _call(single_buffer_weights=True)
    except Exception:
        # If this jax/Mosaic version does not honor pipeline_mode on the
        # top-level grid pipeline, fall back to default double buffering.
        out = _call(single_buffer_weights=False)

    value = out.reshape(G * tm)[:M].reshape(B, S, 1)
    return value


def _init_linear(key, fan_in, fan_out, dtype=jnp.float32):
    # Deterministic init mimicking nn.Linear default bounds.
    kw, kb = jax.random.split(key)
    bound = 1.0 / math.sqrt(fan_in)
    w = jax.random.uniform(kw, (fan_in, fan_out), dtype, -bound, bound)
    b = jax.random.uniform(kb, (fan_out,), dtype, -bound, bound)
    return w, b


def _reference(hs, w1, b1, w2, b2):
    B, S, H = hs.shape
    h = hs.reshape(-1, H) @ w1 + b1
    h = 0.5 * h * (1.0 + jax.lax.erf(h / jnp.sqrt(jnp.float32(2.0))))
    return jax.nn.sigmoid(h @ w2 + b2).reshape(B, S, 1)


if __name__ == "__main__":
    B, S, H = 2, 8, 32
    H2 = H // 2

    key = jax.random.PRNGKey(0)
    kx, k1, k2, kx2 = jax.random.split(key, 4)

    hidden_states = jax.random.normal(kx, (B, S, H), jnp.float32)
    w1, b1 = _init_linear(k1, H, H2)
    w2, b2 = _init_linear(k2, H2, 1)

    ref = _reference(hidden_states, w1, b1, w2, b2)

    # Exact f32 path: tight parity with the PyTorch module.
    value_f32 = value_estimator_forward(hidden_states, w1, b1, w2, b2,
                                        matmul_dtype=None)
    value_f32 = jax.block_until_ready(value_f32)
    assert value_f32.shape == (B, S, 1)
    assert jnp.allclose(value_f32, ref, atol=1e-5, rtol=1e-5)

    # Default fast path: bf16 MXU operands (cast in-kernel), f32 accumulation
    # and f32 epilogue — loose tolerance.
    value_bf16 = value_estimator_forward(hidden_states, w1, b1, w2, b2)
    value_bf16 = jax.block_until_ready(value_bf16)
    assert value_bf16.shape == (B, S, 1)
    assert jnp.allclose(value_bf16, ref, atol=3e-2, rtol=0)

    # Ragged-row case (M % tm != 0): exercises the un-padded partial last block.
    B2, S2 = 3, 5
    hs2 = jax.random.normal(kx2, (B2, S2, H), jnp.float32)
    v2 = value_estimator_forward(hs2, w1, b1, w2, b2, matmul_dtype=None)
    v2 = jax.block_until_ready(v2)
    ref2 = _reference(hs2, w1, b1, w2, b2)
    assert v2.shape == (B2, S2, 1)
    assert jnp.allclose(v2, ref2, atol=1e-5, rtol=1e-5)

    print("KERNEL_OK")
</pallas_src>

<mosaic_0001>
module attributes {stable_mosaic.version = 11 : i64} {
  func.func @_value_net_kernel(%arg0: i32, %arg1: memref<16x32xf32, #tpu.memory_space<vmem>>, %arg2: memref<32x16xf32, #tpu.memory_space<vmem>>, %arg3: memref<1x16xf32, #tpu.memory_space<vmem>>, %arg4: memref<1x16xf32, #tpu.memory_space<vmem>>, %arg5: memref<1x1xf32, #tpu.memory_space<vmem>>, %arg6: memref<1x1x16xf32, #tpu.memory_space<vmem>>) attributes {dimension_semantics = [#tpu.dimension_semantics<parallel>], iteration_bounds = array<i64: 1>, scalar_prefetch = 0 : i64, scratch_operands = 0 : i64, tpu.core_type = #tpu.core_type<tc>, window_params = [{transform_indices = @transform_0, window_bounds = array<i64: 16, 32>}, {pipeline_mode = #tpu.pipeline_mode<synchronous>, transform_indices = @transform_1, window_bounds = array<i64: 32, 16>}, {pipeline_mode = #tpu.pipeline_mode<synchronous>, transform_indices = @transform_2, window_bounds = array<i64: 1, 16>}, {pipeline_mode = #tpu.pipeline_mode<synchronous>, transform_indices = @transform_3, window_bounds = array<i64: 1, 16>}, {pipeline_mode = #tpu.pipeline_mode<synchronous>, transform_indices = @transform_4, window_bounds = array<i64: 1, 1>}, {transform_indices = @transform_5, window_bounds = array<i64: 1, 1, 16>}]} {
    %c0 = arith.constant 0 : index
    %c0_0 = arith.constant 0 : index
    %0 = vector.load %arg1[%c0, %c0_0] : memref<16x32xf32, #tpu.memory_space<vmem>>, vector<16x32xf32>
    %c0_1 = arith.constant 0 : index
    %c0_2 = arith.constant 0 : index
    %1 = vector.load %arg2[%c0_1, %c0_2] : memref<32x16xf32, #tpu.memory_space<vmem>>, vector<32x16xf32>
    %cst = arith.constant dense<0.000000e+00> : vector<16x16xf32>
    %2 = tpu.matmul %0, %1, %cst {dimension_numbers = #tpu.dot_dimension_numbers<[1], [0], [0], [1], [0, 0, 1, 1], [], []>, precision = #tpu.contract_precision<fp32>} : vector<16x32xf32>, vector<32x16xf32>, vector<16x16xf32> -> vector<16x16xf32>
    %c0_3 = arith.constant 0 : index
    %c0_4 = arith.constant 0 : index
    %3 = vector.load %arg3[%c0_3, %c0_4] : memref<1x16xf32, #tpu.memory_space<vmem>>, vector<1x16xf32>
    %4 = vector.broadcast %3 : vector<1x16xf32> to vector<16x16xf32>
    %5 = arith.addf %2, %4 : vector<16x16xf32>
    %cst_5 = arith.constant 5.000000e-01 : f32
    %6 = vector.broadcast %cst_5 : f32 to vector<16x16xf32>
    %7 = arith.mulf %6, %5 : vector<16x16xf32>
    %cst_6 = arith.constant 0.707106769 : f32
    %8 = vector.broadcast %cst_6 : f32 to vector<16x16xf32>
    %9 = arith.mulf %5, %8 : vector<16x16xf32>
    %10 = math.erf %9 : vector<16x16xf32>
    %cst_7 = arith.constant 1.000000e+00 : f32
    %11 = vector.broadcast %cst_7 : f32 to vector<16x16xf32>
    %12 = arith.addf %11, %10 : vector<16x16xf32>
    %13 = arith.mulf %7, %12 : vector<16x16xf32>
    %c0_8 = arith.constant 0 : index
    %c0_9 = arith.constant 0 : index
    %14 = vector.load %arg4[%c0_8, %c0_9] : memref<1x16xf32, #tpu.memory_space<vmem>>, vector<1x16xf32>
    %15 = vector.broadcast %14 : vector<1x16xf32> to vector<16x16xf32>
    %16 = arith.mulf %13, %15 : vector<16x16xf32>
    %cst_10 = arith.constant dense<0.000000e+00> : vector<16xf32>
    %17 = vector.multi_reduction <add>, %16, %cst_10 [1] : vector<16x16xf32> to vector<16xf32>
    %18 = vector.shape_cast %17 : vector<16xf32> to vector<16x1xf32>
    %c0_11 = arith.constant 0 : index
    %c0_12 = arith.constant 0 : index
    %19 = vector.load %arg5[%c0_11, %c0_12] : memref<1x1xf32, #tpu.memory_space<vmem>>, vector<1x1xf32>
    %20 = vector.broadcast %19 : vector<1x1xf32> to vector<16x1xf32>
    %21 = arith.addf %18, %20 : vector<16x1xf32>
    %22 = arith.negf %21 : vector<16x1xf32>
    %23 = math.exp %22 : vector<16x1xf32>
    %cst_13 = arith.constant 1.000000e+00 : f32
    %24 = vector.broadcast %cst_13 : f32 to vector<16x1xf32>
    %25 = arith.addf %24, %23 : vector<16x1xf32>
    %26 = arith.divf %24, %25 : vector<16x1xf32>
    %27 = vector.shape_cast %26 : vector<16x1xf32> to vector<1x1x16xf32>
    %c0_14 = arith.constant 0 : index
    %c0_15 = arith.constant 0 : index
    %c0_16 = arith.constant 0 : index
    %28 = vector.load %arg6[%c0_14, %c0_15, %c0_16] : memref<1x1x16xf32, #tpu.memory_space<vmem>>, vector<1x1x16xf32>
    tpu.vector_store %arg6[%c0_14, %c0_15, %c0_16], %27 {strides = array<i32>} : memref<1x1x16xf32, #tpu.memory_space<vmem>>, vector<1x1x16xf32>,
    return
  }
  func.func @transform_0(%arg0: i32) -> (i32, i32) {
    %c0_i32 = arith.constant 0 : i32
    %c0_i32_0 = arith.constant 0 : i32
    return %arg0, %c0_i32 : i32, i32
  }
  func.func @transform_1(%arg0: i32) -> (i32, i32) {
    %c0_i32 = arith.constant 0 : i32
    %c0_i32_0 = arith.constant 0 : i32
    %c0_i32_1 = arith.constant 0 : i32
    return %c0_i32, %c0_i32_0 : i32, i32
  }
  func.func @transform_2(%arg0: i32) -> (i32, i32) {
    %c0_i32 = arith.constant 0 : i32
    %c0_i32_0 = arith.constant 0 : i32
    %c0_i32_1 = arith.constant 0 : i32
    return %c0_i32, %c0_i32_0 : i32, i32
  }
  func.func @transform_3(%arg0: i32) -> (i32, i32) {
    %c0_i32 = arith.constant 0 : i32
    %c0_i32_0 = arith.constant 0 : i32
    %c0_i32_1 = arith.constant 0 : i32
    return %c0_i32, %c0_i32_0 : i32, i32
  }
  func.func @transform_4(%arg0: i32) -> (i32, i32) {
    %c0_i32 = arith.constant 0 : i32
    %c0_i32_0 = arith.constant 0 : i32
    %c0_i32_1 = arith.constant 0 : i32
    return %c0_i32, %c0_i32_0 : i32, i32
  }
  func.func @transform_5(%arg0: i32) -> (i32, i32, i32) {
    %c0_i32 = arith.constant 0 : i32
    %c0_i32_0 = arith.constant 0 : i32
    %c0_i32_1 = arith.constant 0 : i32
    return %arg0, %c0_i32, %c0_i32_0 : i32, i32, i32
  }
}

module attributes {stable_mosaic.version = 11 : i64} {
  func.func @_value_net_kernel(%arg0: i32, %arg1: memref<16x32xf32, #tpu.memory_space<vmem>>, %arg2: memref<32x16xf32, #tpu.memory_space<vmem>>, %arg3: memref<1x16xf32, #tpu.memory_space<vmem>>, %arg4: memref<1x16xf32, #tpu.memory_space<vmem>>, %arg5: memref<1x1xf32, #tpu.memory_space<vmem>>, %arg6: memref<1x1x16xf32, #tpu.memory_space<vmem>>) attributes {dimension_semantics = [#tpu.dimension_semantics<parallel>], iteration_bounds = array<i64: 1>, scalar_prefetch = 0 : i64, scratch_operands = 0 : i64, tpu.core_type = #tpu.core_type<tc>, window_params = [{transform_indices = @transform_0, window_bounds = array<i64: 16, 32>}, {pipeline_mode = #tpu.pipeline_mode<synchronous>, transform_indices = @transform_1, window_bounds = array<i64: 32, 16>}, {pipeline_mode = #tpu.pipeline_mode<synchronous>, transform_indices = @transform_2, window_bounds = array<i64: 1, 16>}, {pipeline_mode = #tpu.pipeline_mode<synchronous>, transform_indices = @transform_3, window_bounds = array<i64: 1, 16>}, {pipeline_mode = #tpu.pipeline_mode<synchronous>, transform_indices = @transform_4, window_bounds = array<i64: 1, 1>}, {transform_indices = @transform_5, window_bounds = array<i64: 1, 1, 16>}]} {
    %c0 = arith.constant 0 : index
    %c0_0 = arith.constant 0 : index
    %0 = vector.load %arg1[%c0, %c0_0] : memref<16x32xf32, #tpu.memory_space<vmem>>, vector<16x32xf32>
    %c0_1 = arith.constant 0 : index
    %c0_2 = arith.constant 0 : index
    %1 = vector.load %arg2[%c0_1, %c0_2] : memref<32x16xf32, #tpu.memory_space<vmem>>, vector<32x16xf32>
    %cst = arith.constant dense<0.000000e+00> : vector<16x16xf32>
    %2 = tpu.matmul %0, %1, %cst {dimension_numbers = #tpu.dot_dimension_numbers<[1], [0], [0], [1], [0, 0, 1, 1], [], []>, precision = #tpu.contract_precision<fp32>} : vector<16x32xf32>, vector<32x16xf32>, vector<16x16xf32> -> vector<16x16xf32>
    %c0_3 = arith.constant 0 : index
    %c0_4 = arith.constant 0 : index
    %3 = vector.load %arg3[%c0_3, %c0_4] : memref<1x16xf32, #tpu.memory_space<vmem>>, vector<1x16xf32>
    %4 = vector.broadcast %3 : vector<1x16xf32> to vector<16x16xf32>
    %5 = arith.addf %2, %4 : vector<16x16xf32>
    %cst_5 = arith.constant 5.000000e-01 : f32
    %6 = vector.broadcast %cst_5 : f32 to vector<16x16xf32>
    %7 = arith.mulf %6, %5 : vector<16x16xf32>
    %cst_6 = arith.constant 0.707106769 : f32
    %8 = vector.broadcast %cst_6 : f32 to vector<16x16xf32>
    %9 = arith.mulf %5, %8 : vector<16x16xf32>
    %10 = math.erf %9 : vector<16x16xf32>
    %cst_7 = arith.constant 1.000000e+00 : f32
    %11 = vector.broadcast %cst_7 : f32 to vector<16x16xf32>
    %12 = arith.addf %11, %10 : vector<16x16xf32>
    %13 = arith.mulf %7, %12 : vector<16x16xf32>
    %c0_8 = arith.constant 0 : index
    %c0_9 = arith.constant 0 : index
    %14 = vector.load %arg4[%c0_8, %c0_9] : memref<1x16xf32, #tpu.memory_space<vmem>>, vector<1x16xf32>
    %15 = vector.broadcast %14 : vector<1x16xf32> to vector<16x16xf32>
    %16 = arith.mulf %13, %15 : vector<16x16xf32>
    %cst_10 = arith.constant dense<0.000000e+00> : vector<16xf32>
    %17 = vector.multi_reduction <add>, %16, %cst_10 [1] : vector<16x16xf32> to vector<16xf32>
    %18 = vector.shape_cast %17 : vector<16xf32> to vector<16x1xf32>
    %c0_11 = arith.constant 0 : index
    %c0_12 = arith.constant 0 : index
    %19 = vector.load %arg5[%c0_11, %c0_12] : memref<1x1xf32, #tpu.memory_space<vmem>>, vector<1x1xf32>
    %20 = vector.broadcast %19 : vector<1x1xf32> to vector<16x1xf32>
    %21 = arith.addf %18, %20 : vector<16x1xf32>
    %22 = arith.negf %21 : vector<16x1xf32>
    %23 = math.exp %22 : vector<16x1xf32>
    %cst_13 = arith.constant 1.000000e+00 : f32
    %24 = vector.broadcast %cst_13 : f32 to vector<16x1xf32>
    %25 = arith.addf %24, %23 : vector<16x1xf32>
    %26 = arith.divf %24, %25 : vector<16x1xf32>
    %27 = vector.shape_cast %26 : vector<16x1xf32> to vector<1x1x16xf32>
    %c0_14 = arith.constant 0 : index
    %c0_15 = arith.constant 0 : index
    %c0_16 = arith.constant 0 : index
    %28 = vector.load %arg6[%c0_14, %c0_15, %c0_16] : memref<1x1x16xf32, #tpu.memory_space<vmem>>, vector<1x1x16xf32>
    tpu.vector_store %arg6[%c0_14, %c0_15, %c0_16], %27 {strides = array<i32>} : memref<1x1x16xf32, #tpu.memory_space<vmem>>, vector<1x1x16xf32>,
    return
  }
  func.func @transform_0(%arg0: i32) -> (i32, i32) {
    %c0_i32 = arith.constant 0 : i32
    %c0_i32_0 = arith.constant 0 : i32
    return %arg0, %c0_i32 : i32, i32
  }
  func.func @transform_1(%arg0: i32) -> (i32, i32) {
    %c0_i32 = arith.constant 0 : i32
    %c0_i32_0 = arith.constant 0 : i32
    %c0_i32_1 = arith.constant 0 : i32
    return %c0_i32, %c0_i32_0 : i32, i32
  }
  func.func @transform_2(%arg0: i32) -> (i32, i32) {
    %c0_i32 = arith.constant 0 : i32
    %c0_i32_0 = arith.constant 0 : i32
    %c0_i32_1 = arith.constant 0 : i32
    return %c0_i32, %c0_i32_0 : i32, i32
  }
  func.func @transform_3(%arg0: i32) -> (i32, i32) {
    %c0_i32 = arith.constant 0 : i32
    %c0_i32_0 = arith.constant 0 : i32
    %c0_i32_1 = arith.constant 0 : i32
    return %c0_i32, %c0_i32_0 : i32, i32
  }
  func.func @transform_4(%arg0: i32) -> (i32, i32) {
    %c0_i32 = arith.constant 0 : i32
    %c0_i32_0 = arith.constant 0 : i32
    %c0_i32_1 = arith.constant 0 : i32
    return %c0_i32, %c0_i32_0 : i32, i32
  }
  func.func @transform_5(%arg0: i32) -> (i32, i32, i32) {
    %c0_i32 = arith.constant 0 : i32
    %c0_i32_0 = arith.constant 0 : i32
    %c0_i32_1 = arith.constant 0 : i32
    return %arg0, %c0_i32, %c0_i32_0 : i32, i32, i32
  }
}

</mosaic_0001>

<bundles_post_ra>
// kernel: tpu_custom_call.1
= control target key start
LH: loop header
LB: loop body
LE: loop exit
PB: predicated region body
PF: predicated region fallthrough
CT: control target
= control target key end

     0   :  { %s946_s0 = inlined_call_operand.vmem [shape: f32[16,32], index: 0, kind: input, shape index: {}]   ;;  %s947_s1 = inlined_call_operand.vmem [shape: f32[32,16], index: 1, kind: input, shape index: {}]   ;;  %s948_s2 = inlined_call_operand.vmem [shape: f32[1,16], index: 2, kind: input, shape index: {}]   ;;  %s949_s3 = inlined_call_operand.vmem [shape: f32[1,16], index: 3, kind: input, shape index: {}]   ;;  %s950_s4 = inlined_call_operand.<no memory space> [shape: f32[1,1], index: 4, kind: input, shape index: {}]   ;;  %s951_s5 = inlined_call_operand.hbm [shape: f32[1,1,16], index: 5, kind: output, shape index: {}]  }
   0x1   :  { %v10_v0 = vstv %s950_s4 }
   0x2   :  { %11 = vst [vmem:[#allocation2] sm:$0x1] %v10_v0 }
   0x3   :  { %v25_v1 = vld [vmem:[%s947_s1] sm:$0xff]  ;;  %v26_v2 = vld [vmem:[%s947_s1 + $0x8] sm:$0xff]  ;;  %v27_v3 = vld [vmem:[%s947_s1 + $0x10] sm:$0xff]  ;;  %vm36_vm0 = vcmask 261120  }
   0x4   :  { %v44_v4 = vand.u32 4294901760, %v25_v1  ;;  %v47_v5 = vand.u32 4294901760, %v26_v2  ;;  %v28_v6 = vld [vmem:[%s947_s1 + $0x18] sm:$0xff]  ;;  %v50_v7 = vand.u32 4294901760, %v27_v3  ;;  %v23_v8 = vld [vmem:[%s946_s0] sm:$0xff]  ;;  %v24_v9 = vld [vmem:[%s946_s0 + $0x8] sm:$0xff] }
   0x5   :  { %v53_v10 = vand.u32 4294901760, %v28_v6  ;;  %v38_v11 = vsel %vm36_vm0, %v23_v8, 0  ;;  %v41_v12 = vsel %vm36_vm0, %v24_v9, 0 }
   0x6   :  { %v763_v13 = vpack.c.bf16 %v47_v5, %v44_v4  ;;  %v916_v14 = vand.u32 4294901760, %v38_v11  ;;  %v918_v15 = vand.u32 4294901760, %v41_v12  ;;  %v134_v16 = vsub.f32 %v25_v1, %v44_v4 }
   0x7   :  { %12 = vsyncpa [#allocation4], 0  ;;  %v767_v17 = vpack.c.bf16 %v53_v10, %v50_v7  ;;  %v141_v18 = vsub.f32 %v26_v2, %v47_v5  ;;  %v148_v19 = vsub.f32 %v27_v3, %v50_v7  ;;  %v155_v20 = vsub.f32 %v28_v6, %v53_v10  ;;  %v656_v47 = vld [vmem:[%s948_s2] ss:$0 sm:$0xff] }
   0x8   :  { %764 = vmatprep.subr.bf16.mxu1 %v763_v13  ;;  %788 = vmatprep.subr.bf16.mxu0 %v763_v13  ;;  %v113_v21 = vsub.f32 %v38_v11, %v916_v14  ;;  %v123_v22 = vsub.f32 %v41_v12, %v918_v15  ;;  %v135_v23 = vand.u32 4294901760, %v134_v16  ;;  %v657_v0 = vld [vmem:[%s949_s3] ss:$0 sm:$0xff]  ;;  %vm590_vm1 = vcmask 130048   ;;  %s864_s3 = smov [#allocation3]  }
   0x9   :  { %766 = vmatpush3.bf16.msra.mxu1 %v763_v13  ;;  %790 = vmatpush3.bf16.msra.mxu0 %v763_v13  ;;  %v142_v24 = vand.u32 4294901760, %v141_v18  ;;  %v149_v25 = vand.u32 4294901760, %v148_v19  ;;  %v156_v26 = vand.u32 4294901760, %v155_v20  ;;  %v779_v45 = vpack.c.bf16 %v141_v18, %v134_v16  ;;  %v658_v8 = vld [vmem:[#allocation2] ss:$0 sm:$0xff]  ;;  %s648_s7 = sshll.u32 %s864_s3, 4  ;;  %s649_s7 = int_to_ptr.vmem [resolvable:$true] %s648_s7 }
   0xa   :  { %768 = vmatprep.subr.bf16.mxu1 %v767_v17  ;;  %792 = vmatprep.subr.bf16.mxu0 %v767_v17  ;;  %v114_v27 = vand.u32 4294901760, %v113_v21  ;;  %v124_v28 = vand.u32 4294901760, %v123_v22  ;;  %v136_v29 = vsub.f32 %v134_v16, %v135_v23  ;;  %v783_v46 = vpack.c.bf16 %v155_v20, %v148_v19  ;;  %s839_s8 = scalar_lea.vmem %s649_s7, 16  ;;  %s843_s9 = scalar_lea.vmem %s649_s7, 32 }
   0xb   :  { %v143_v30 = vsub.f32 %v141_v18, %v142_v24  ;;  %v795_v31 = vpack.c.bf16 %v142_v24, %v135_v23  ;;  %v150_v32 = vsub.f32 %v148_v19, %v149_v25  ;;  %v157_v33 = vsub.f32 %v155_v20, %v156_v26  ;;  %p840_p0 = scmp.ne.s32.totalorder %s649_s7, %s839_s8  ;;  %p844_p1 = scmp.lt.s32.totalorder %s649_s7, %s649_s7 }
   0xc   :  { %v115_v34 = vsub.f32 %v113_v21, %v114_v27  ;;  %738 = vmatprep.mubr.f32.mxu0 %v114_v27  ;;  %v125_v35 = vsub.f32 %v123_v22, %v124_v28  ;;  %v137_v36 = vand.u32 4294901760, %v136_v29  ;;  %v799_v44 = vpack.c.bf16 %v156_v26, %v149_v25  ;;  %p845_p2 = scmp.lt.s32.totalorder %s843_s9, %s839_s8 }
   0xd   :  { %770 = vmatpush3.bf16.msra.mxu1 %v767_v17  ;;  %794 = vmatpush3.bf16.msra.mxu0 %v767_v17  ;;  %v144_v37 = vand.u32 4294901760, %v143_v30  ;;  %v151_v38 = vand.u32 4294901760, %v150_v32  ;;  %v158_v39 = vand.u32 4294901760, %v157_v33  ;;  %v863_v7 = vmov 0  }
   0xe   :  { %v116_v40 = vand.u32 4294901760, %v115_v34  ;;  %v126_v41 = vand.u32 4294901760, %v125_v35  ;;  %796 = vmatprep.subr.bf16.mxu0 %v795_v31  ;;  %825 = vset.pattern.permute.xlu1 %v863_v7  ;;  %vm637_vm2 = vcmask 130112   ;;  %vm640_vm3 = vcmask 122880   ;;  %p846_p3 = por %p845_p2, %p844_p1 }
   0xf   :  { %v771_v42 = vpack.c.bf16 %v144_v37, %v137_v36  ;;  %v775_v43 = vpack.c.bf16 %v158_v39, %v151_v38  ;;  %826 = vset.pattern.permute.xlu0 %v863_v7 }
  0x10   :  { %705 = vmatprep.mubr.f32.mxu1 %v116_v40  ;;  %739 = vmatmul.mubr.f32.vlgmr.msra.gmra.mrb[0].mxu0 %v124_v28  ;;  %p847_p4 = pnand %p846_p3, %p840_p0 }
  0x11   :  { %706 = vmatmul.mubr.f32.vlgmr.msra.gmra.mrb[0].mxu1 %v126_v41  ;;  %772 = vmatprep.subr.bf16.mxu1 %v771_v42 }
  0x12   :  { %774 = vmatpush3.bf16.msra.mxu1 %v771_v42  ;;  %798 = vmatpush3.bf16.msra.mxu0 %v795_v31 }
  0x13   :  { %776 = vmatprep.subr.bf16.mxu1 %v775_v43  ;;  %800 = vmatprep.subr.bf16.mxu0 %v799_v44 }
  0x14   :  { %716 = vmatprep.mubr.f32.mxu1 %v916_v14  ;;  %749 = vmatprep.mubr.f32.mxu0 %v916_v14 }
  0x16   :  { %778 = vmatpush3.bf16.msra.mxu1 %v775_v43  ;;  %802 = vmatpush3.bf16.msra.mxu0 %v799_v44 }
  0x17   :  { %780 = vmatprep.subr.bf16.mxu1 %v779_v45  ;;  %804 = vmatprep.subr.bf16.mxu0 %v763_v13 }
  0x19   :  { %717 = vmatmul.mubr.f32.vlgmr.msra.gmra.mrb[0].mxu1 %v918_v15  ;;  %750 = vmatmul.mubr.f32.vlgmr.msra.gmra.mrb[0].mxu0 %v918_v15 }
  0x1a   :  { %782 = vmatpush3.bf16.msra.mxu1 %v779_v45  ;;  %806 = vmatpush3.bf16.msra.mxu0 %v763_v13 }
  0x1b   :  { %784 = vmatprep.subr.bf16.mxu1 %v783_v46  ;;  %808 = vmatprep.subr.bf16.mxu0 %v767_v17 }
  0x1c   :  { %727 = vmatprep.mubr.f32.mxu1 %v113_v21  ;;  %760 = vmatprep.mubr.f32.mxu0 %v916_v14  ;;  %v626_v21 = vlaneseq }
  0x1e   :  { %786 = vmatpush3.bf16.msra.mxu1 %v783_v46  ;;  %810 = vmatpush3.bf16.msra.mxu0 %v767_v17  ;;  %v629_v23 = vshrl.u32 %v626_v21, 7 }
  0x21   :  { %728 = vmatmul.mubr.f32.vlgmr.msra.gmra.mrb[0].mxu1 %v123_v22  ;;  %761 = vmatmul.mubr.f32.vlgmr.msra.gmra.mrb[0].mxu0 %v918_v15  ;;  %v627_v22 = vand.u32 127, %v626_v21 }
  0x23   :  { %v632_v24 = vadd.s32 4294967288, %v627_v22  ;;  %v630_v26 = vsub.s32 %v627_v22, %v629_v23 }
  0x25   :  { %v635_v27 = vsub.s32 %v632_v24, %v629_v23 }
  0xf4   :  { %v729_v48 = vpop.f32.mrb[0].mxu1  ;;  %v762_v49 = vpop.f32.mrb[0].mxu0 }
  0xf5   :  { %v811_v50 = vadd.f32 %v729_v48, %v656_v47  ;;  %v305_v51 = vpop.f32.mrb[1].mxu1  ;;  %v561_v52 = vpop.f32.mrb[1].mxu0 }
  0xf6   :  { %v813_v53 = vadd.f32 %v656_v47, %v305_v51 }
  0xf7   :  { %v812_v54 = vadd.f32 %v811_v50, %v762_v49 }
  0xf8   :  { %v814_v55 = vadd.f32 %v813_v53, %v561_v52 }
  0xf9   :  { %v574_v56 = vmul.f32 0.70710677, %v812_v54  ;;  %v572_v61 = vmul.f32 0.5, %v812_v54 }
  0xfa   :  { %v573_v57 = vmul.f32 0.70710677, %v814_v55  ;;  %v571_v62 = vmul.f32 0.5, %v814_v55 }
  0xfb   :  { %827 = verf.f32 %v574_v56 }
  0xfc   :  { %829 = verf.f32 %v573_v57 }
 0x105   :  { %v828_v58 = vpop.eup %827 }
 0x106   :  { %v830_v59 = vpop.eup %829  ;;  %v578_v60 = vadd.f32 1.0, %v828_v58 }
 0x107   :  { %v577_v63 = vadd.f32 1.0, %v830_v59 }
 0x108   :  { %v580_v2 = vmul.f32 %v578_v60, %v572_v61 }
 0x109   :  { %v579_v1 = vmul.f32 %v577_v63, %v571_v62 }
 0x10a   :  { %v589_v5 = vmul.f32 %v657_v0, %v580_v2 }
 0x10b   :  { %v588_v3 = vmul.f32 %v657_v0, %v579_v1 }
 0x10c   :  { %v594_v6 = vsel %vm590_vm1, %v589_v5, 0.0 }
 0x10d   :  { %v591_v4 = vsel %vm590_vm1, %v588_v3, 0.0 }
 0x10e   :  { %592 = vadd.xlane.f32.xlu0 %v591_v4 }
 0x112   :  { %595 = vadd.xlane.f32.xlu0 %v594_v6 }
 0x19b   :  { %v593_v9 = vpop.xlane.xlu0 %592 }
 0x19c   :  { %v604_v10 = vadd.f32 %v658_v8, %v593_v9 }
 0x19e   :  { %v659_v11 = vmul.f32 -1.442695, %v604_v10 }
 0x19f   :  { %v596_v12 = vpop.xlane.xlu0 %595 }
 0x1a0   :  { %831 = vpow2.f32 %v659_v11  ;;  %v605_v13 = vadd.f32 %v658_v8, %v596_v12 }
 0x1a2   :  { %v660_v14 = vmul.f32 -1.442695, %v605_v13 }
 0x1a4   :  { %833 = vpow2.f32 %v660_v14 }
 0x1aa   :  { %v832_v15 = vpop.eup %831 }
 0x1ab   :  { %v612_v16 = vadd.f32 1.0, %v832_v15 }
 0x1ad   :  { %835 = vrcp.f32 %v612_v16 }
 0x1ae   :  { %v834_v17 = vpop.eup %833 }
 0x1af   :  { %v613_v18 = vadd.f32 1.0, %v834_v17 }
 0x1b1   :  { %837 = vrcp.f32 %v613_v18 }
 0x1b7   :  { %v836_v19 = vpop.eup %835 }
 0x1b8   :  { %621 = vperm.xlu1 %825, %v836_v19  }
 0x1bb   :  { %v838_v20 = vpop.eup %837 }
 0x1bc   :  { %624 = vperm.xlu1 %825, %v838_v20  }
 0x237   :  { %v622_v25 = vpop.permute.xlu1 %621 }
 0x238   :  { %v631_v29 = vrot.slane %v622_v25, %v630_v26 }
 0x23b   :  { %v625_v28 = vpop.permute.xlu1 %624 }
 0x23c   :  { %v636_v30 = vrot.slane %v625_v28, %v635_v27 }
 0x23e   :  { %v638_v31 = vsel %vm637_vm2, %v636_v30, %v631_v29 }
 0x23f   :  { %641 = vst.msk [vmem:[#allocation3] sm:$0x1] %vm640_vm3, %v638_v31 }
 0x240   :  { %850 = shalt.err (!%p847_p4)
}
 0x241   :  { %s851_s12 = scalar_lea.hbm %s951_s5, 16 }
 0x242   :  { %p852_p5 = scmp.ne.s32.totalorder %s951_s5, %s851_s12  ;;  %p855_p6 = scmp.lt.u32.totalorder %s851_s12, %s951_s5 }
 0x244   :  { %p857_p7 = pnand %p855_p6, %p852_p5 }
 0x246   :  { %860 = shalt.err (!%p857_p7)
}
 0x247   :  { %651 = dma.vmem_to_hbm [thread:$0]  %s649_s7, 16, %s951_s5, [#allocation4]  }
 0x248   :  { %861 = dma.done.wait [#allocation4], 16  }
 0x249   :  { %862 = vsyncadd [#allocation4], 4294967280 }
 0x24a   :  { %655 = vsyncpa [#allocation4], 1 }

// kernel: tpu_custom_call.1
= control target key start
LH: loop header
LB: loop body
LE: loop exit
PB: predicated region body
PF: predicated region fallthrough
CT: control target
= control target key end

     0   :  { %s946_s0 = inlined_call_operand.vmem [shape: f32[16,32], index: 0, kind: input, shape index: {}]   ;;  %s947_s1 = inlined_call_operand.vmem [shape: f32[32,16], index: 1, kind: input, shape index: {}]   ;;  %s948_s2 = inlined_call_operand.vmem [shape: f32[1,16], index: 2, kind: input, shape index: {}]   ;;  %s949_s3 = inlined_call_operand.vmem [shape: f32[1,16], index: 3, kind: input, shape index: {}]   ;;  %s950_s4 = inlined_call_operand.<no memory space> [shape: f32[1,1], index: 4, kind: input, shape index: {}]   ;;  %s951_s5 = inlined_call_operand.hbm [shape: f32[1,1,16], index: 5, kind: output, shape index: {}]  }
   0x1   :  { %v10_v0 = vstv %s950_s4 }
   0x2   :  { %11 = vst [vmem:[#allocation2] sm:$0x1] %v10_v0 }
   0x3   :  { %v25_v1 = vld [vmem:[%s947_s1] sm:$0xff]  ;;  %v26_v2 = vld [vmem:[%s947_s1 + $0x8] sm:$0xff]  ;;  %v27_v3 = vld [vmem:[%s947_s1 + $0x10] sm:$0xff]  ;;  %vm36_vm0 = vcmask 261120  }
   0x4   :  { %v44_v4 = vand.u32 4294901760, %v25_v1  ;;  %v47_v5 = vand.u32 4294901760, %v26_v2  ;;  %v28_v6 = vld [vmem:[%s947_s1 + $0x18] sm:$0xff]  ;;  %v50_v7 = vand.u32 4294901760, %v27_v3  ;;  %v23_v8 = vld [vmem:[%s946_s0] sm:$0xff]  ;;  %v24_v9 = vld [vmem:[%s946_s0 + $0x8] sm:$0xff] }
   0x5   :  { %v53_v10 = vand.u32 4294901760, %v28_v6  ;;  %v38_v11 = vsel %vm36_vm0, %v23_v8, 0  ;;  %v41_v12 = vsel %vm36_vm0, %v24_v9, 0 }
   0x6   :  { %v763_v13 = vpack.c.bf16 %v47_v5, %v44_v4  ;;  %v916_v14 = vand.u32 4294901760, %v38_v11  ;;  %v918_v15 = vand.u32 4294901760, %v41_v12  ;;  %v134_v16 = vsub.f32 %v25_v1, %v44_v4 }
   0x7   :  { %12 = vsyncpa [#allocation4], 0  ;;  %v767_v17 = vpack.c.bf16 %v53_v10, %v50_v7  ;;  %v141_v18 = vsub.f32 %v26_v2, %v47_v5  ;;  %v148_v19 = vsub.f32 %v27_v3, %v50_v7  ;;  %v155_v20 = vsub.f32 %v28_v6, %v53_v10  ;;  %v656_v47 = vld [vmem:[%s948_s2] ss:$0 sm:$0xff] }
   0x8   :  { %764 = vmatprep.subr.bf16.mxu1 %v763_v13  ;;  %788 = vmatprep.subr.bf16.mxu0 %v763_v13  ;;  %v113_v21 = vsub.f32 %v38_v11, %v916_v14  ;;  %v123_v22 = vsub.f32 %v41_v12, %v918_v15  ;;  %v135_v23 = vand.u32 4294901760, %v134_v16  ;;  %v657_v0 = vld [vmem:[%s949_s3] ss:$0 sm:$0xff]  ;;  %vm590_vm1 = vcmask 130048   ;;  %s864_s3 = smov [#allocation3]  }
   0x9   :  { %766 = vmatpush3.bf16.msra.mxu1 %v763_v13  ;;  %790 = vmatpush3.bf16.msra.mxu0 %v763_v13  ;;  %v142_v24 = vand.u32 4294901760, %v141_v18  ;;  %v149_v25 = vand.u32 4294901760, %v148_v19  ;;  %v156_v26 = vand.u32 4294901760, %v155_v20  ;;  %v779_v45 = vpack.c.bf16 %v141_v18, %v134_v16  ;;  %v658_v8 = vld [vmem:[#allocation2] ss:$0 sm:$0xff]  ;;  %s648_s7 = sshll.u32 %s864_s3, 4  ;;  %s649_s7 = int_to_ptr.vmem [resolvable:$true] %s648_s7 }
   0xa   :  { %768 = vmatprep.subr.bf16.mxu1 %v767_v17  ;;  %792 = vmatprep.subr.bf16.mxu0 %v767_v17  ;;  %v114_v27 = vand.u32 4294901760, %v113_v21  ;;  %v124_v28 = vand.u32 4294901760, %v123_v22  ;;  %v136_v29 = vsub.f32 %v134_v16, %v135_v23  ;;  %v783_v46 = vpack.c.bf16 %v155_v20, %v148_v19  ;;  %s839_s8 = scalar_lea.vmem %s649_s7, 16  ;;  %s843_s9 = scalar_lea.vmem %s649_s7, 32 }
   0xb   :  { %v143_v30 = vsub.f32 %v141_v18, %v142_v24  ;;  %v795_v31 = vpack.c.bf16 %v142_v24, %v135_v23  ;;  %v150_v32 = vsub.f32 %v148_v19, %v149_v25  ;;  %v157_v33 = vsub.f32 %v155_v20, %v156_v26  ;;  %p840_p0 = scmp.ne.s32.totalorder %s649_s7, %s839_s8  ;;  %p844_p1 = scmp.lt.s32.totalorder %s649_s7, %s649_s7 }
   0xc   :  { %v115_v34 = vsub.f32 %v113_v21, %v114_v27  ;;  %738 = vmatprep.mubr.f32.mxu0 %v114_v27  ;;  %v125_v35 = vsub.f32 %v123_v22, %v124_v28  ;;  %v137_v36 = vand.u32 4294901760, %v136_v29  ;;  %v799_v44 = vpack.c.bf16 %v156_v26, %v149_v25  ;;  %p845_p2 = scmp.lt.s32.totalorder %s843_s9, %s839_s8 }
   0xd   :  { %770 = vmatpush3.bf16.msra.mxu1 %v767_v17  ;;  %794 = vmatpush3.bf16.msra.mxu0 %v767_v17  ;;  %v144_v37 = vand.u32 4294901760, %v143_v30  ;;  %v151_v38 = vand.u32 4294901760, %v150_v32  ;;  %v158_v39 = vand.u32 4294901760, %v157_v33  ;;  %v863_v7 = vmov 0  }
   0xe   :  { %v116_v40 = vand.u32 4294901760, %v115_v34  ;;  %v126_v41 = vand.u32 4294901760, %v125_v35  ;;  %796 = vmatprep.subr.bf16.mxu0 %v795_v31  ;;  %825 = vset.pattern.permute.xlu1 %v863_v7  ;;  %vm637_vm2 = vcmask 130112   ;;  %vm640_vm3 = vcmask 122880   ;;  %p846_p3 = por %p845_p2, %p844_p1 }
   0xf   :  { %v771_v42 = vpack.c.bf16 %v144_v37, %v137_v36  ;;  %v775_v43 = vpack.c.bf16 %v158_v39, %v151_v38  ;;  %826 = vset.pattern.permute.xlu0 %v863_v7 }
  0x10   :  { %705 = vmatprep.mubr.f32.mxu1 %v116_v40  ;;  %739 = vmatmul.mubr.f32.vlgmr.msra.gmra.mrb[0].mxu0 %v124_v28  ;;  %p847_p4 = pnand %p846_p3, %p840_p0 }
  0x11   :  { %706 = vmatmul.mubr.f32.vlgmr.msra.gmra.mrb[0].mxu1 %v126_v41  ;;  %772 = vmatprep.subr.bf16.mxu1 %v771_v42 }
  0x12   :  { %774 = vmatpush3.bf16.msra.mxu1 %v771_v42  ;;  %798 = vmatpush3.bf16.msra.mxu0 %v795_v31 }
  0x13   :  { %776 = vmatprep.subr.bf16.mxu1 %v775_v43  ;;  %800 = vmatprep.subr.bf16.mxu0 %v799_v44 }
  0x14   :  { %716 = vmatprep.mubr.f32.mxu1 %v916_v14  ;;  %749 = vmatprep.mubr.f32.mxu0 %v916_v14 }
  0x16   :  { %778 = vmatpush3.bf16.msra.mxu1 %v775_v43  ;;  %802 = vmatpush3.bf16.msra.mxu0 %v799_v44 }
  0x17   :  { %780 = vmatprep.subr.bf16.mxu1 %v779_v45  ;;  %804 = vmatprep.subr.bf16.mxu0 %v763_v13 }
  0x19   :  { %717 = vmatmul.mubr.f32.vlgmr.msra.gmra.mrb[0].mxu1 %v918_v15  ;;  %750 = vmatmul.mubr.f32.vlgmr.msra.gmra.mrb[0].mxu0 %v918_v15 }
  0x1a   :  { %782 = vmatpush3.bf16.msra.mxu1 %v779_v45  ;;  %806 = vmatpush3.bf16.msra.mxu0 %v763_v13 }
  0x1b   :  { %784 = vmatprep.subr.bf16.mxu1 %v783_v46  ;;  %808 = vmatprep.subr.bf16.mxu0 %v767_v17 }
  0x1c   :  { %727 = vmatprep.mubr.f32.mxu1 %v113_v21  ;;  %760 = vmatprep.mubr.f32.mxu0 %v916_v14  ;;  %v626_v21 = vlaneseq }
  0x1e   :  { %786 = vmatpush3.bf16.msra.mxu1 %v783_v46  ;;  %810 = vmatpush3.bf16.msra.mxu0 %v767_v17  ;;  %v629_v23 = vshrl.u32 %v626_v21, 7 }
  0x21   :  { %728 = vmatmul.mubr.f32.vlgmr.msra.gmra.mrb[0].mxu1 %v123_v22  ;;  %761 = vmatmul.mubr.f32.vlgmr.msra.gmra.mrb[0].mxu0 %v918_v15  ;;  %v627_v22 = vand.u32 127, %v626_v21 }
  0x23   :  { %v632_v24 = vadd.s32 4294967288, %v627_v22  ;;  %v630_v26 = vsub.s32 %v627_v22, %v629_v23 }
  0x25   :  { %v635_v27 = vsub.s32 %v632_v24, %v629_v23 }
  0xf4   :  { %v729_v48 = vpop.f32.mrb[0].mxu1  ;;  %v762_v49 = vpop.f32.mrb[0].mxu0 }
  0xf5   :  { %v811_v50 = vadd.f32 %v729_v48, %v656_v47  ;;  %v305_v51 = vpop.f32.mrb[1].mxu1  ;;  %v561_v52 = vpop.f32.mrb[1].mxu0 }
  0xf6   :  { %v813_v53 = vadd.f32 %v656_v47, %v305_v51 }
  0xf7   :  { %v812_v54 = vadd.f32 %v811_v50, %v762_v49 }
  0xf8   :  { %v814_v55 = vadd.f32 %v813_v53, %v561_v52 }
  0xf9   :  { %v574_v56 = vmul.f32 0.70710677, %v812_v54  ;;  %v572_v61 = vmul.f32 0.5, %v812_v54 }
  0xfa   :  { %v573_v57 = vmul.f32 0.70710677, %v814_v55  ;;  %v571_v62 = vmul.f32 0.5, %v814_v55 }
  0xfb   :  { %827 = verf.f32 %v574_v56 }
  0xfc   :  { %829 = verf.f32 %v573_v57 }
 0x105   :  { %v828_v58 = vpop.eup %827 }
 0x106   :  { %v830_v59 = vpop.eup %829  ;;  %v578_v60 = vadd.f32 1.0, %v828_v58 }
 0x107   :  { %v577_v63 = vadd.f32 1.0, %v830_v59 }
 0x108   :  { %v580_v2 = vmul.f32 %v578_v60, %v572_v61 }
 0x109   :  { %v579_v1 = vmul.f32 %v577_v63, %v571_v62 }
 0x10a   :  { %v589_v5 = vmul.f32 %v657_v0, %v580_v2 }
 0x10b   :  { %v588_v3 = vmul.f32 %v657_v0, %v579_v1 }
 0x10c   :  { %v594_v6 = vsel %vm590_vm1, %v589_v5, 0.0 }
 0x10d   :  { %v591_v4 = vsel %vm590_vm1, %v588_v3, 0.0 }
 0x10e   :  { %592 = vadd.xlane.f32.xlu0 %v591_v4 }
 0x112   :  { %595 = vadd.xlane.f32.xlu0 %v594_v6 }
 0x19b   :  { %v593_v9 = vpop.xlane.xlu0 %592 }
 0x19c   :  { %v604_v10 = vadd.f32 %v658_v8, %v593_v9 }
 0x19e   :  { %v659_v11 = vmul.f32 -1.442695, %v604_v10 }
 0x19f   :  { %v596_v12 = vpop.xlane.xlu0 %595 }
 0x1a0   :  { %831 = vpow2.f32 %v659_v11  ;;  %v605_v13 = vadd.f32 %v658_v8, %v596_v12 }
 0x1a2   :  { %v660_v14 = vmul.f32 -1.442695, %v605_v13 }
 0x1a4   :  { %833 = vpow2.f32 %v660_v14 }
 0x1aa   :  { %v832_v15 = vpop.eup %831 }
 0x1ab   :  { %v612_v16 = vadd.f32 1.0, %v832_v15 }
 0x1ad   :  { %835 = vrcp.f32 %v612_v16 }
 0x1ae   :  { %v834_v17 = vpop.eup %833 }
 0x1af   :  { %v613_v18 = vadd.f32 1.0, %v834_v17 }
 0x1b1   :  { %837 = vrcp.f32 %v613_v18 }
 0x1b7   :  { %v836_v19 = vpop.eup %835 }
 0x1b8   :  { %621 = vperm.xlu1 %825, %v836_v19  }
 0x1bb   :  { %v838_v20 = vpop.eup %837 }
 0x1bc   :  { %624 = vperm.xlu1 %825, %v838_v20  }
 0x237   :  { %v622_v25 = vpop.permute.xlu1 %621 }
 0x238   :  { %v631_v29 = vrot.slane %v622_v25, %v630_v26 }
 0x23b   :  { %v625_v28 = vpop.permute.xlu1 %624 }
 0x23c   :  { %v636_v30 = vrot.slane %v625_v28, %v635_v27 }
 0x23e   :  { %v638_v31 = vsel %vm637_vm2, %v636_v30, %v631_v29 }
 0x23f   :  { %641 = vst.msk [vmem:[#allocation3] sm:$0x1] %vm640_vm3, %v638_v31 }
 0x240   :  { %850 = shalt.err (!%p847_p4)
}
 0x241   :  { %s851_s12 = scalar_lea.hbm %s951_s5, 16 }
 0x242   :  { %p852_p5 = scmp.ne.s32.totalorder %s951_s5, %s851_s12  ;;  %p855_p6 = scmp.lt.u32.totalorder %s851_s12, %s951_s5 }
 0x244   :  { %p857_p7 = pnand %p855_p6, %p852_p5 }
 0x246   :  { %860 = shalt.err (!%p857_p7)
}
 0x247   :  { %651 = dma.vmem_to_hbm [thread:$0]  %s649_s7, 16, %s951_s5, [#allocation4]  }
 0x248   :  { %861 = dma.done.wait [#allocation4], 16  }
 0x249   :  { %862 = vsyncadd [#allocation4], 4294967280 }
 0x24a   :  { %655 = vsyncpa [#allocation4], 1 }

</bundles_post_ra>
